<compile_context>
chip_gen: v7x
topology: tpu7x:2x2x1
jax: 0.10.0
libtpu: 0.0.40
codegen_flags: <defaults>
</compile_context>

<pallas_src>
import jax
import jax.numpy as jnp
from jax.experimental import pallas as pl
from jax.experimental.pallas import tpu as pltpu


def _chomp_copy_kernel(x_ref, o_ref):
    # x_ref: (TM, in_cols) VMEM tile; o_ref: (TM, K) VMEM tile.
    # in_cols >= K in all paths; the output is the first K lanes of the tile.
    o_ref[...] = x_ref[:, : o_ref.shape[-1]]


def _round_up(x: int, m: int) -> int:
    return ((x + m - 1) // m) * m


def _vmem_budget_and_limit() -> tuple[int, int]:
    """Generation-aware pipelined-VMEM budget and vmem_limit_bytes."""
    try:
        cap = int(pltpu.get_tpu_info().vmem_capacity_bytes)
    except Exception:  # pragma: no cover - conservative fallback
        cap = 64 * 1024 * 1024
    if cap <= 64 * 1024 * 1024:
        # v7x: only 64 MiB of VMEM per TensorCore.
        return 16 * 1024 * 1024, 48 * 1024 * 1024
    # v5e / v6e: 128 MiB of VMEM.
    return 24 * 1024 * 1024, 64 * 1024 * 1024


def _pick_tm(rows: int, in_cols: int, out_cols: int, itemsize: int,
             budget: int) -> int:
    """Rows per block: sized by bytes so each step saturates the HBM pipeline."""
    pack = max(8, 32 // itemsize)  # sublane packing: 8 f32, 16 bf16, 32 int8
    if rows <= pack:
        # Block first dim equals the full array dim -> no (8,128) constraint.
        return rows
    # Double-buffered input + output bytes per row of the block.
    bytes_per_row = 2 * (in_cols + out_cols) * itemsize
    tm = budget // max(bytes_per_row, 1)
    tm = max(pack, min(tm, rows))
    return (tm // pack) * pack


def chomp1d(x: jax.Array, chomp_size: int) -> jax.Array:
    """Pallas implementation of Chomp1d.forward: x[:, :, :-chomp_size]."""
    M, H, Kpad = x.shape
    # PyTorch's x[:, :, :-0] would return an empty tensor; in TCNs
    # chomp_size = (kernel_size-1)*dilation > 0, so we require a positive chomp.
    if not (0 < chomp_size < Kpad):
        raise ValueError(
            f"chomp_size must satisfy 0 < chomp_size < Kpad; got "
            f"chomp_size={chomp_size}, Kpad={Kpad} (note: PyTorch's "
            f"x[:, :, :-0] yields an empty tensor, which is not supported).")
    K = Kpad - chomp_size

    rows = M * H
    x2 = x.reshape(rows, Kpad)  # zero-copy collapse of (M, H) for row-major x
    itemsize = jnp.dtype(x.dtype).itemsize

    # Generalized tail-skip: read only the first round_up(K, 128) columns when
    # that window fits inside Kpad (multiple of 128 -> legal BlockSpec);
    # otherwise fall back to the full extent Kpad (also legal).
    k_aligned = _round_up(K, 128)
    in_cols = k_aligned if k_aligned <= Kpad else Kpad

    budget, vmem_limit = _vmem_budget_and_limit()
    tm = _pick_tm(rows, in_cols, K, itemsize, budget)
    grid = (pl.cdiv(rows, tm),)

    in_spec = pl.BlockSpec((tm, in_cols), lambda i: (i, 0))
    out_spec = pl.BlockSpec((tm, K), lambda i: (i, 0))

    y2 = pl.pallas_call(
        _chomp_copy_kernel,
        out_shape=jax.ShapeDtypeStruct((rows, K), x.dtype),
        grid=grid,
        in_specs=[in_spec],
        out_specs=out_spec,
        compiler_params=pltpu.CompilerParams(
            # Shards the row-block grid across TensorCores where available;
            # harmless no-op on single-TC v5e/v6e.
            dimension_semantics=("parallel",),
            vmem_limit_bytes=vmem_limit,
        ),
        # Pure copy: zero flops, bytes = read(in_cols cols) + write(K cols).
        cost_estimate=pl.CostEstimate(
            flops=0,
            transcendentals=0,
            bytes_accessed=rows * (in_cols + K) * itemsize,
        ),
    )(x2)

    return y2.reshape(M, H, K)


if __name__ == "__main__":
    key = jax.random.PRNGKey(0)

    # Case 1: small deterministic example consistent with [M, H, Kpad]; K=13
    # (not lane-aligned) exercises the round_up-tail-skip fallback to Kpad.
    M, H, Kpad = 2, 4, 16
    chomp_size = 3
    x = jax.random.normal(key, (M, H, Kpad), dtype=jnp.float32)
    y = jax.block_until_ready(chomp1d(x, chomp_size))
    y_ref = x[:, :, :-chomp_size]
    assert y.shape == (M, H, Kpad - chomp_size)
    assert jnp.array_equal(y, y_ref), "Pallas Chomp1d mismatch vs reference (case 1)"

    # Case 2: rows not a multiple of the sublane packing -> exercises the
    # multi-block grid path with a partial (masked) last row block.
    M2, H2, Kpad2, chomp2 = 3, 5, 20, 4
    x2 = jax.random.normal(jax.random.PRNGKey(0), (M2, H2, Kpad2), dtype=jnp.float32)
    y2 = jax.block_until_ready(chomp1d(x2, chomp2))
    assert jnp.array_equal(y2, x2[:, :, :-chomp2]), "Pallas Chomp1d mismatch (case 2)"

    # Case 3: K lane-aligned (K = 128) -> input block exactly (tm, 128); the
    # chomped tail is never read from HBM.
    M3, H3, Kpad3, chomp3 = 2, 16, 140, 12
    x3 = jax.random.normal(jax.random.PRNGKey(0), (M3, H3, Kpad3), dtype=jnp.float32)
    y3 = jax.block_until_ready(chomp1d(x3, chomp3))
    assert jnp.array_equal(y3, x3[:, :, :-chomp3]), "Pallas Chomp1d mismatch (case 3)"

    # Case 4: generalized tail-skip with unaligned K: K=200 -> reads only
    # round_up(200, 128) = 256 of the 300 input columns per row block.
    M4, H4, Kpad4, chomp4 = 2, 8, 300, 100
    x4 = jax.random.normal(jax.random.PRNGKey(0), (M4, H4, Kpad4), dtype=jnp.float32)
    y4 = jax.block_until_ready(chomp1d(x4, chomp4))
    assert jnp.array_equal(y4, x4[:, :, :-chomp4]), "Pallas Chomp1d mismatch (case 4)"

    # Case 5: bf16 dtype -> exercises the 16-row sublane packing in _pick_tm.
    x5 = jax.random.normal(jax.random.PRNGKey(0), (2, 4, 32), dtype=jnp.bfloat16)
    y5 = jax.block_until_ready(chomp1d(x5, 5))
    assert jnp.array_equal(y5, x5[:, :, :-5]), "Pallas Chomp1d mismatch (case 5)"

    print("KERNEL_OK")
</pallas_src>

<mosaic_0001>
module attributes {stable_mosaic.version = 11 : i64} {
  func.func @_chomp_copy_kernel(%arg0: i32, %arg1: memref<8x16xf32, #tpu.memory_space<vmem>>, %arg2: memref<8x13xf32, #tpu.memory_space<vmem>>) attributes {dimension_semantics = [#tpu.dimension_semantics<parallel>], iteration_bounds = array<i64: 1>, scalar_prefetch = 0 : i64, scratch_operands = 0 : i64, tpu.core_type = #tpu.core_type<tc>, window_params = [{transform_indices = @transform_0, window_bounds = array<i64: 8, 16>}, {transform_indices = @transform_1, window_bounds = array<i64: 8, 13>}]} {
    %c0 = arith.constant 0 : index
    %c0_0 = arith.constant 0 : index
    %0 = vector.load %arg1[%c0, %c0_0] : memref<8x16xf32, #tpu.memory_space<vmem>>, vector<8x13xf32>
    %c0_1 = arith.constant 0 : index
    %c0_2 = arith.constant 0 : index
    %1 = vector.load %arg2[%c0_1, %c0_2] : memref<8x13xf32, #tpu.memory_space<vmem>>, vector<8x13xf32>
    tpu.vector_store %arg2[%c0_1, %c0_2], %0 {strides = array<i32>} : memref<8x13xf32, #tpu.memory_space<vmem>>, vector<8x13xf32>,
    return
  }
  func.func @transform_0(%arg0: i32) -> (i32, i32) {
    %c0_i32 = arith.constant 0 : i32
    %c0_i32_0 = arith.constant 0 : i32
    return %arg0, %c0_i32 : i32, i32
  }
  func.func @transform_1(%arg0: i32) -> (i32, i32) {
    %c0_i32 = arith.constant 0 : i32
    %c0_i32_0 = arith.constant 0 : i32
    return %arg0, %c0_i32 : i32, i32
  }
}

</mosaic_0001>

<bundles_post_ra>
// kernel: tpu_custom_call.1
= control target key start
LH: loop header
LB: loop body
LE: loop exit
PB: predicated region body
PF: predicated region fallthrough
CT: control target
= control target key end

     0   :  { %6 = vsyncpa [#allocation3], 0  ;;  %s125_s0 = inlined_call_operand.hbm [shape: f32[8,16], index: 0, kind: input, shape index: {}]   ;;  %s126_s1 = inlined_call_operand.hbm [shape: f32[8,13], index: 1, kind: output, shape index: {}]  }
   0x1   :  { %7 = vsyncpa [#allocation4], 0  ;;  %s89_s6 = smov [#allocation2]   ;;  %s41_s10 = scalar_lea.hbm %s125_s0, 128 }
   0x2   :  { %s14_s7 = sshll.u32 %s89_s6, 4  ;;  %p42_p0 = scmp.ne.s32.totalorder %s125_s0, %s41_s10  ;;  %s15_s7 = int_to_ptr.vmem [resolvable:$true] %s14_s7 }
   0x3   :  { %p45_p1 = scmp.lt.u32.totalorder %s41_s10, %s125_s0 }
   0x5   :  { %p47_p2 = pnand %p45_p1, %p42_p0 }
   0x7   :  { %50 = shalt.err (!%p47_p2)
}
   0x8   :  { %s51_s15 = scalar_lea.vmem %s15_s7, 128  ;;  %p56_p4 = scmp.lt.s32.totalorder %s15_s7, %s15_s7 }
   0x9   :  { %p52_p3 = scmp.ne.s32.totalorder %s15_s7, %s51_s15  ;;  %p57_p5 = scmp.lt.s32.totalorder %s51_s15, %s51_s15 }
   0xb   :  { %p58_p6 = por %p57_p5, %p56_p4 }
   0xd   :  { %p59_p7 = pnand %p58_p6, %p52_p3 }
   0xf   :  { %62 = shalt.err (!%p59_p7)
}
  0x10   :  { %17 = dma.hbm_to_vmem [thread:$0]  %s125_s0, 128, %s15_s7, [#allocation3]  }
  0x11   :  { %85 = dma.done.wait [#allocation3], 128  }
  0x12   :  { %86 = vsyncadd [#allocation3], 4294967168  ;;  %s90_s18 = smov [#allocation5]   ;;  %vm22_vm0 = vcmask 105472   ;;  %v21_v0 = vld [vmem:[#allocation2] sm:$0xff] }
  0x13   :  { %s30_s19 = sshll.u32 %s90_s18, 4  ;;  %23 = vst.msk [vmem:[#allocation5] sm:$0xff] %vm22_vm0, %v21_v0  ;;  %s31_s19 = int_to_ptr.vmem [resolvable:$true] %s30_s19 }
  0x14   :  { %s63_s20 = scalar_lea.vmem %s31_s19, 128  ;;  %p68_p9 = scmp.lt.s32.totalorder %s31_s19, %s31_s19 }
  0x15   :  { %p64_p8 = scmp.ne.s32.totalorder %s31_s19, %s63_s20  ;;  %p69_p10 = scmp.lt.s32.totalorder %s63_s20, %s63_s20 }
  0x17   :  { %p70_p11 = por %p69_p10, %p68_p9 }
  0x19   :  { %p71_p12 = pnand %p70_p11, %p64_p8 }
  0x1b   :  { %74 = shalt.err (!%p71_p12)
}
  0x1c   :  { %s75_s23 = scalar_lea.hbm %s126_s1, 128 }
  0x1d   :  { %p76_p13 = scmp.ne.s32.totalorder %s126_s1, %s75_s23  ;;  %p79_p0 = scmp.lt.u32.totalorder %s75_s23, %s126_s1 }
  0x1f   :  { %p81_p1 = pnand %p79_p0, %p76_p13 }
  0x21   :  { %84 = shalt.err (!%p81_p1)
}
  0x22   :  { %33 = dma.vmem_to_hbm [thread:$0]  %s31_s19, 128, %s126_s1, [#allocation4]  }
  0x23   :  { %87 = dma.done.wait [#allocation4], 128  }
  0x24   :  { %88 = vsyncadd [#allocation4], 4294967168 }
  0x25   :  { %37 = vsyncpa [#allocation3], 1 }
  0x26   :  { %38 = vsyncpa [#allocation4], 1 }

</bundles_post_ra>
